<compile_context>
chip_gen: v5e
topology: v5e:2x2
jax: 0.10.0
libtpu: 0.0.40
codegen_flags: <defaults>
</compile_context>

<pallas_src>
import functools

import jax
import jax.numpy as jnp
from jax.experimental import pallas as pl
from jax.experimental.pallas import tpu as pltpu

_LANES = 128           # time is laid out along the last (lane) axis
_MAX_BLOCK_ROWS = 512  # ~512x128 f32 rows/tile hits the HBM roofline; fits v7x VMEM


def _ma_windowed_sum_kernel(x_ref, inv_ws_ref, o_ref, *, win: int, lanes: int):
    """One time-chunk of the moving average.

    x_ref:      VMEM f32[block_rows, (1+halo)*lanes]  haloed samples; x[r, c] = base[r*lanes + c]
    inv_ws_ref: SMEM f32[1]                           1 / window_size (hoisted divisor)
    o_ref:      VMEM f32[block_rows, lanes]           moving averages for this chunk
    """
    x = x_ref[...]
    acc = x[:, 0:lanes]
    for k in range(1, win):              # W is small & static: W-1 shifted VPU adds
        acc = acc + x[:, k:k + lanes]
    o_ref[...] = acc * inv_ws_ref[0]     # single whole-tile multiply by 1/window_size
    # TODO(synk): for large W (>~16) switch to a cumsum-difference form to bound per-tile XLU work.


@jax.jit
def moving_average_stream(values, samples, window_size):
    """Moving average over a whole sample stream.

    values:  f32[W] buffer state on entry (oldest first, torch.roll order)
    samples: f32[T] new samples
    window_size:    divisor used by forward()
    Returns (avgs[T], new_values[W]).
    """
    values = jnp.asarray(values, jnp.float32)
    samples = jnp.asarray(samples, jnp.float32)
    W = values.shape[0]
    T = samples.shape[0]
    L = _LANES

    inv_ws = (jnp.float32(1.0) / jnp.asarray(window_size, jnp.float32)).reshape(1)

    # out[t] = sum_{k=0}^{W-1} base[t+k] / window_size,  base = concat(values[1:], samples)
    rows = max(1, pl.cdiv(T, L))
    if rows <= _MAX_BLOCK_ROWS:
        block_rows = ((rows + 7) // 8) * 8          # sublane-aligned, single grid step
    else:
        block_rows = _MAX_BLOCK_ROWS
    rows_padded = pl.cdiv(rows, block_rows) * block_rows
    halo_rows = pl.cdiv(W - 1, L)                   # extra rows needed for the window halo
    ncol = (halo_rows + 1) * L

    base = jnp.concatenate([values[1:], samples])
    base = jnp.pad(base, (0, (rows_padded + halo_rows) * L - base.shape[0]))
    base2 = base.reshape(rows_padded + halo_rows, L)
    # Haloed, lane-dense layout: x2[r, i*L + l] = base[(r+i)*L + l]  =>  x2[r, c] = base[r*L + c]
    x2 = jnp.concatenate([base2[i:i + rows_padded] for i in range(halo_rows + 1)], axis=1)

    out = pl.pallas_call(
        functools.partial(_ma_windowed_sum_kernel, win=W, lanes=L),
        out_shape=jax.ShapeDtypeStruct((rows_padded, L), jnp.float32),
        grid=(rows_padded // block_rows,),
        in_specs=[
            pl.BlockSpec((block_rows, ncol), lambda i: (i, 0)),   # haloed samples (VMEM)
            pl.BlockSpec(memory_space=pltpu.SMEM),                # 1/window_size scalar
        ],
        out_specs=pl.BlockSpec((block_rows, L), lambda i: (i, 0)),
        compiler_params=pltpu.CompilerParams(
            dimension_semantics=("parallel",)),                   # chunks independent (halo'd)
    )(x2, inv_ws)

    avgs = out.reshape(-1)[:T]
    # Buffer state after T updates, canonical oldest-first (torch.roll) order.
    new_values = jnp.concatenate([values, samples])[-W:]
    return avgs, new_values


class MovingAverage:
    """JAX/Pallas mirror of the PyTorch MovingAverage module."""

    def __init__(self, window_size: int = 3):
        self.window_size = window_size
        self.values = jnp.zeros((window_size,), dtype=jnp.float32)  # matches torch.zeros

    # --- faithful per-sample API (tiny work: plain JAX, no kernel launch) -----
    def update(self, value) -> None:
        v = jnp.asarray(value, jnp.float32).reshape(1)
        self.values = jnp.concatenate([self.values[1:], v])

    def get(self):
        return jnp.sum(self.values) / jnp.float32(self.window_size)

    def __call__(self, value, window_size: int):
        # Per perf review: a T=1 pallas_call is >99% launch overhead, so the
        # per-sample path stays in plain JAX; use forward_stream for throughput.
        self.window_size = window_size
        self.update(value)
        return self.get()

    # --- fused Pallas path: whole stream in one kernel launch -----------------
    def forward_stream(self, samples, window_size: int):
        self.window_size = window_size
        samples = jnp.asarray(samples, jnp.float32).reshape(-1)
        avgs, self.values = moving_average_stream(
            self.values, samples, jnp.float32(window_size))
        return avgs


if __name__ == "__main__":
    key = jax.random.PRNGKey(0)

    # --- small test matching the module defaults ------------------------------
    seq_len = 8
    window_size = 3
    samples = jax.random.normal(key, (seq_len,), dtype=jnp.float32)

    # Pure-JAX reference of the per-step torch semantics.
    ref_buf = jnp.zeros((window_size,), dtype=jnp.float32)
    refs = []
    for t in range(seq_len):
        ref_buf = jnp.concatenate([ref_buf[1:], samples[t:t + 1]])
        refs.append(jnp.sum(ref_buf) / window_size)
    refs = jnp.stack(refs)

    ma_stream = MovingAverage(window_size=window_size)
    outs_stream = jax.block_until_ready(ma_stream.forward_stream(samples, window_size))

    ma_step = MovingAverage(window_size=window_size)
    outs_step = jnp.stack([ma_step(samples[t], window_size) for t in range(seq_len)])
    outs_step = jax.block_until_ready(outs_step)

    assert outs_stream.shape == (seq_len,)
    assert jnp.allclose(outs_stream, refs, atol=1e-6), (outs_stream, refs)
    assert jnp.allclose(outs_step, refs, atol=1e-6), (outs_step, refs)
    assert jnp.allclose(ma_stream.values, ref_buf, atol=1e-6)
    assert jnp.allclose(ma_step.values, ref_buf, atol=1e-6)

    # --- longer stream / different window: exercises multi-row lane-dense tiles
    seq_len2, window2 = 2000, 5
    samples2 = jax.random.normal(jax.random.PRNGKey(1), (seq_len2,), dtype=jnp.float32)
    ma2 = MovingAverage(window_size=window2)
    outs2 = jax.block_until_ready(ma2.forward_stream(samples2, window2))
    ext = jnp.concatenate([jnp.zeros((window2,), jnp.float32), samples2])
    ref2 = sum(ext[1 + k: 1 + k + seq_len2] for k in range(window2)) / window2
    assert jnp.allclose(outs2, ref2, atol=1e-5), float(jnp.max(jnp.abs(outs2 - ref2)))
    assert jnp.allclose(ma2.values, samples2[-window2:], atol=1e-6)

    print("KERNEL_OK")
</pallas_src>

<mosaic_0001>
module attributes {stable_mosaic.version = 11 : i64} {
  func.func @_ma_windowed_sum_kernel(%arg0: i32, %arg1: memref<8x256xf32, #tpu.memory_space<vmem>>, %arg2: memref<1xf32, #tpu.memory_space<smem>>, %arg3: memref<8x128xf32, #tpu.memory_space<vmem>>) attributes {dimension_semantics = [#tpu.dimension_semantics<parallel>], iteration_bounds = array<i64: 1>, scalar_prefetch = 0 : i64, scratch_operands = 0 : i64, tpu.core_type = #tpu.core_type<tc>, window_params = [{transform_indices = @transform_0, window_bounds = array<i64: 8, 256>}, {transform_indices = @transform_1, window_bounds = array<i64: 1>}, {transform_indices = @transform_2, window_bounds = array<i64: 8, 128>}]} {
    %c0 = arith.constant 0 : index
    %c0_0 = arith.constant 0 : index
    %0 = vector.load %arg1[%c0, %c0_0] : memref<8x256xf32, #tpu.memory_space<vmem>>, vector<8x256xf32>
    %1 = vector.extract_strided_slice %0 {offsets = [0, 0], sizes = [8, 128], strides = [1, 1]} : vector<8x256xf32> to vector<8x128xf32>
    %2 = vector.extract_strided_slice %0 {offsets = [0, 1], sizes = [8, 128], strides = [1, 1]} : vector<8x256xf32> to vector<8x128xf32>
    %3 = arith.addf %1, %2 : vector<8x128xf32>
    %4 = vector.extract_strided_slice %0 {offsets = [0, 2], sizes = [8, 128], strides = [1, 1]} : vector<8x256xf32> to vector<8x128xf32>
    %5 = arith.addf %3, %4 : vector<8x128xf32>
    %c0_1 = arith.constant 0 : index
    %6 = memref.load %arg2[%c0_1] : memref<1xf32, #tpu.memory_space<smem>>
    %7 = vector.broadcast %6 : f32 to vector<8x128xf32>
    %8 = arith.mulf %5, %7 : vector<8x128xf32>
    %c0_2 = arith.constant 0 : index
    %c0_3 = arith.constant 0 : index
    %9 = vector.load %arg3[%c0_2, %c0_3] : memref<8x128xf32, #tpu.memory_space<vmem>>, vector<8x128xf32>
    tpu.vector_store %arg3[%c0_2, %c0_3], %8 {strides = array<i32>} : memref<8x128xf32, #tpu.memory_space<vmem>>, vector<8x128xf32>,
    return
  }
  func.func @transform_0(%arg0: i32) -> (i32, i32) {
    %c0_i32 = arith.constant 0 : i32
    %c0_i32_0 = arith.constant 0 : i32
    return %arg0, %c0_i32 : i32, i32
  }
  func.func @transform_1(%arg0: i32) -> i32 {
    %c0_i32 = arith.constant 0 : i32
    %c0_i32_0 = arith.constant 0 : i32
    return %c0_i32 : i32
  }
  func.func @transform_2(%arg0: i32) -> (i32, i32) {
    %c0_i32 = arith.constant 0 : i32
    %c0_i32_0 = arith.constant 0 : i32
    return %arg0, %c0_i32 : i32, i32
  }
}

</mosaic_0001>

<bundles_post_ra>
// kernel: moving_average_stream.1
= control target key start
LH: loop header
LB: loop body
LE: loop exit
PB: predicated region body
PF: predicated region fallthrough
CT: control target
= control target key end

     0   :  { %s42_s11 = smov 126   ;;  %s43_s12 = smov 127   ;;  %vm20_vm0 = vcmask 1039360   ;;  %vm28_vm1 = vcmask 1031168   ;;  %s71_s0 = inlined_call_operand.vmem [shape: f32[8,256], index: 0, kind: input, shape index: {}]   ;;  %s72_s1 = inlined_call_operand.<no memory space> [shape: f32[1], index: 1, kind: input, shape index: {}]   ;;  %s73_s2 = inlined_call_operand.vmem [shape: f32[8,128], index: 2, kind: output, shape index: {}]  }
   0x1   :  { %v12_v0 = vld [vmem:[%s71_s0] sm:$0xff]  ;;  %v13_v1 = vld [vmem:[%s71_s0 + $0x8] sm:$0xff]  ;;  %v33_v9 = vstv %s72_s1 }
   0x2   :  { %24 = vrot.lane.b32.xlu1 %v12_v0, %s42_s11  ;;  %16 = vrot.lane.b32.xlu0 %v12_v0, %s43_s12 }
   0xa   :  { %26 = vrot.lane.b32.xlu1 %v13_v1, %s42_s11  ;;  %18 = vrot.lane.b32.xlu0 %v13_v1, %s43_s12 }
  0x74   :  { %v25_v2 = vpop.permute.xlu1 %24  ;;  %v17_v3 = vpop.permute.xlu0 %16 }
  0x7c   :  { %v27_v4 = vpop.permute.xlu1 %26  ;;  %v19_v5 = vpop.permute.xlu0 %18 }
  0x7d   :  { %v21_v6 = vsel %vm20_vm0, %v17_v3, %v19_v5  ;;  %v29_v8 = vsel %vm28_vm1, %v25_v2, %v27_v4 }
  0x7e   :  { %v23_v7 = vadd.f32 %v21_v6, %v12_v0 }
  0x80   :  { %v31_v10 = vadd.f32 %v29_v8, %v23_v7 }
  0x82   :  { %v34_v11 = vmul.f32 %v33_v9, %v31_v10 }
  0x84   :  { %35 = vst [vmem:[%s73_s2] sm:$0xff] %v34_v11 }

</bundles_post_ra>
